<compile_context>
chip_gen: v7x
topology: tpu7x:2x2x1
jax: 0.10.0
libtpu: 0.0.40
codegen_flags: <defaults>
</compile_context>

<pallas_src>
import functools

import jax
import jax.numpy as jnp
from jax import lax
from jax.experimental import pallas as pl
from jax.experimental.pallas import tpu as pltpu


def _round_up(n, m):
    return ((n + m - 1) // m) * m


def _cdiv(a, b):
    return (a + b - 1) // b


def _critic_kernel(n_layers, activation, compute_dtype, *refs):
    """Transposed MLP forward for one batch tile.

    refs = (obs_ref, wT_0..wT_{L-2}, w_{L-1}, bT_0..bT_{L-2}, b_{L-1}, out_ref)

    Hidden activations are (features, tile_b): batch lives on the lane axis, so the
    last layer (hidden -> 1) is a VPU multiply + sublane reduce that produces a
    lane-dense (1, tile_b) row written straight to out_ref.
    """
    obs_ref = refs[0]
    w_refs = refs[1 : 1 + n_layers]
    b_refs = refs[1 + n_layers : 1 + 2 * n_layers]
    out_ref = refs[-1]

    # (tile_b, obs_dim): cast to the MXU operand dtype in-kernel (no-op if already
    # that dtype).  Accumulation below is always f32.
    obs = obs_ref[...].astype(compute_dtype)

    # First hidden layer: contract over obs_dim of BOTH operands (a @ b.T form) so
    # the activation comes out already transposed as (h1, tile_b).
    x = lax.dot_general(
        w_refs[0][...],                 # (h1, obs_dim)  == W1^T, compute_dtype
        obs,                            # (tile_b, obs_dim), compute_dtype
        dimension_numbers=(((1,), (1,)), ((), ())),
        preferred_element_type=jnp.float32,
    )                                   # -> (h1, tile_b) f32
    x = activation(x + b_refs[0][...])  # bias is (h1, 1) f32, broadcast over lanes

    # Remaining hidden layers on the MXU, staying transposed; bf16 operands, f32 acc.
    for i in range(1, n_layers - 1):
        x = jnp.dot(
            w_refs[i][...],                     # (h_i, h_{i-1}), compute_dtype
            x.astype(compute_dtype),            # (h_{i-1}, tile_b)
            preferred_element_type=jnp.float32,
        )
        x = activation(x + b_refs[i][...])

    # Final (hidden -> 1) layer (Identity activation, as in spinup's mlp):
    # VPU broadcast-multiply + XLU sublane reduce in f32; keeps the N=1 matmul off
    # the MXU and writes a lane-dense row.
    w_last = w_refs[-1][...]            # (h_last, 1) f32
    v = jnp.sum(x * w_last, axis=0, keepdims=True) + b_refs[-1][...]   # (1, tile_b)
    out_ref[...] = v.astype(out_ref.dtype)


def proposer_critic_forward(
    obs,
    weights,
    biases,
    *,
    activation=jnp.tanh,
    tile_b=2048,
    compute_dtype=jnp.bfloat16,
    vmem_limit_bytes=None,
):
    """Pallas implementation of ProposerCritic.forward(obs).

    obs:     (B, obs_dim) array (streamed in its own dtype; NOT re-cast in the wrapper)
    weights: list of (in_i, out_i) float32 arrays, last out = 1
    biases:  list of (1, out_i) float32 arrays
    returns: (B,) float32   (== torch.squeeze(v_net(obs), -1))

    compute_dtype is the MXU operand dtype for obs / hidden weights / hidden
    activations (f32 accumulation always).  Default bfloat16: quantizes inputs,
    hidden weights and inter-layer activations to bf16 (~2^-8 relative), which is
    NOT bit-identical to the torch f32 forward.  Pass jnp.float32 for bit-faithful
    f32 semantics (modulo summation order).
    """
    n_layers = len(weights)
    assert n_layers >= 2, "expects at least one hidden layer (spinup mlp always has)"
    B, obs_dim = obs.shape

    # --- Batch tiling -------------------------------------------------------
    # Big lane-aligned tiles; large batches always get an EVEN grid of >= 2 steps
    # so v7x's second TensorCore is used (the extra ~0.35 us step is noise on
    # single-core v5e/v6e).  Small batches stay a single tile.
    tile_b = _round_up(max(int(tile_b), 128), 128)
    b128 = _round_up(B, 128)
    if b128 < 512:
        num_tiles = 1
        tile_eff = b128
    else:
        num_tiles = max(2, _cdiv(b128, tile_b))
        if num_tiles % 2:
            num_tiles += 1
        tile_eff = _round_up(_cdiv(B, num_tiles), 128)
    b_pad = tile_eff * num_tiles
    grid = (num_tiles,)

    # --- obs: pad only if needed, never cast in the wrapper (cast happens in-kernel).
    # Padded tail rows produce tanh(bias) garbage that is sliced off below.
    obs_p = obs if b_pad == B else jnp.pad(obs, ((0, b_pad - B), (0, 0)))

    # --- Parameters in the layout the kernel wants:
    #     hidden weights transposed (out_i, in_i) in compute_dtype (bf16 MXU operands);
    #     last weight kept (h_last, 1) f32 (VPU path);
    #     hidden biases as columns (out_i, 1) f32; last bias (1, 1) f32.
    w_prep = [jnp.asarray(w).astype(compute_dtype).T for w in weights[:-1]] + [
        jnp.asarray(weights[-1], jnp.float32)
    ]
    b_prep = [jnp.asarray(b, jnp.float32).reshape(-1, 1) for b in biases[:-1]] + [
        jnp.asarray(biases[-1], jnp.float32).reshape(1, 1)
    ]

    kernel = functools.partial(_critic_kernel, n_layers, activation, compute_dtype)

    in_specs = [pl.BlockSpec((tile_eff, obs_dim), lambda i: (i, 0))]
    # Params are tiny (~25 KiB total): pin them whole in VMEM, no per-step pipelining.
    for _ in range(2 * n_layers):
        in_specs.append(pl.BlockSpec(memory_space=pltpu.MemorySpace.VMEM))

    # Lane-dense output: one (1, b_pad) row, each grid step writes (1, tile_eff) lanes.
    out_spec = pl.BlockSpec((1, tile_eff), lambda i: (0, i))

    # Advisory cost estimate so XLA schedules around this tiny call sensibly.
    sizes = [tuple(int(s) for s in jnp.shape(w)) for w in weights]
    flops = 2 * b_pad * sum(si * so for si, so in sizes)
    transcendentals = b_pad * sum(so for _, so in sizes[:-1])
    bytes_accessed = int(
        obs_p.size * obs_p.dtype.itemsize
        + b_pad * 4
        + sum(int(w.size) * w.dtype.itemsize for w in w_prep)
        + sum(int(b.size) * 4 for b in b_prep)
    )

    # Per-step VMEM working set is small (obs tile + a few (64, tile_b) f32 planes),
    # well under default scoped limits up to tile_b ~ 8K; only pass an explicit
    # vmem_limit_bytes when pushing huge tiles (v7x physical VMEM is 64 MiB).
    compiler_params = pltpu.CompilerParams(
        dimension_semantics=("parallel",),
        vmem_limit_bytes=vmem_limit_bytes,
    )

    out = pl.pallas_call(
        kernel,
        out_shape=jax.ShapeDtypeStruct((1, b_pad), jnp.float32),
        grid_spec=pltpu.PrefetchScalarGridSpec(
            num_scalar_prefetch=0,
            grid=grid,
            in_specs=in_specs,
            out_specs=out_spec,
        ),
        compiler_params=compiler_params,
        cost_estimate=pl.CostEstimate(
            flops=flops,
            transcendentals=transcendentals,
            bytes_accessed=bytes_accessed,
        ),
    )(obs_p, *w_prep, *b_prep)

    # torch.squeeze(v_net(obs), -1): take the valid lanes of the dense output row.
    return out[0, :B]


def init_mlp_params(key, obs_dim, hidden_sizes):
    """Deterministic synthetic init of the v_net MLP: [obs_dim] + hidden_sizes + [1]."""
    sizes = [obs_dim] + list(hidden_sizes) + [1]
    weights, biases = [], []
    for i in range(len(sizes) - 1):
        key, wk, bk = jax.random.split(key, 3)
        fan_in = sizes[i]
        # Same scale family as torch.nn.Linear default (U(-1/sqrt(fan_in), 1/sqrt(fan_in))).
        bound = 1.0 / jnp.sqrt(jnp.float32(fan_in))
        w = jax.random.uniform(
            wk, (sizes[i], sizes[i + 1]), jnp.float32, minval=-bound, maxval=bound
        )
        b = jax.random.uniform(
            bk, (1, sizes[i + 1]), jnp.float32, minval=-bound, maxval=bound
        )
        weights.append(w)
        biases.append(b)
    return weights, biases


def reference_forward(obs, weights, biases, activation=jnp.tanh,
                      compute_dtype=jnp.float32):
    """Pure-JAX reference matching the kernel's quantization semantics.

    With compute_dtype=bf16 this round-trips obs, hidden weights and inter-layer
    activations through bf16 (f32 accumulation), exactly mirroring the kernel's
    bf16-operand / f32-accumulate MXU path.
    """
    def q(a):
        return a.astype(compute_dtype).astype(jnp.float32)

    n = len(weights)
    x = jnp.asarray(obs, jnp.float32)
    for i in range(n - 1):
        x = activation(q(x) @ q(weights[i]) + biases[i])
    v = x @ weights[-1] + biases[-1]
    return jnp.squeeze(v, axis=-1)


if __name__ == "__main__":
    # Shapes consistent with the module: obs_dim=32, hidden_sizes=(64, 64),
    # activation=tanh (spinup default).
    obs_dim = 32
    hidden_sizes = (64, 64)

    key = jax.random.PRNGKey(0)
    key, obs_key = jax.random.split(key)
    weights, biases = init_mlp_params(key, obs_dim, hidden_sizes)

    ok = True

    # bf16 compute path: small single-tile, ragged single-tile, ragged multi-tile.
    for batch in (8, 300, 1500):
        obs = jax.random.normal(
            jax.random.fold_in(obs_key, batch), (batch, obs_dim), dtype=jnp.float32
        )
        v = proposer_critic_forward(
            obs, weights, biases, activation=jnp.tanh,
            tile_b=2048, compute_dtype=jnp.bfloat16,
        )
        v = jax.block_until_ready(v)
        v_ref = reference_forward(obs, weights, biases, jnp.tanh,
                                  compute_dtype=jnp.bfloat16)
        ok &= v.shape == (batch,)
        ok &= bool(jnp.allclose(v, v_ref, atol=2e-3, rtol=2e-3))
        assert ok, ("bf16", batch)

    # f32 compute path: bit-faithful (modulo summation order) to the torch forward.
    batch = 300
    obs = jax.random.normal(
        jax.random.fold_in(obs_key, 10_000 + batch), (batch, obs_dim), dtype=jnp.float32
    )
    v = proposer_critic_forward(
        obs, weights, biases, activation=jnp.tanh,
        tile_b=2048, compute_dtype=jnp.float32,
    )
    v = jax.block_until_ready(v)
    v_ref = reference_forward(obs, weights, biases, jnp.tanh,
                              compute_dtype=jnp.float32)
    ok &= v.shape == (batch,)
    ok &= bool(jnp.allclose(v, v_ref, atol=1e-5, rtol=1e-5))
    assert ok, ("f32", batch)

    print("KERNEL_OK")
</pallas_src>

<mosaic_0001>
module attributes {stable_mosaic.version = 11 : i64} {
  func.func @_critic_kernel(%arg0: i32, %arg1: memref<128x32xf32, #tpu.memory_space<vmem>>, %arg2: memref<64x32xbf16, #tpu.memory_space<vmem>>, %arg3: memref<64x64xbf16, #tpu.memory_space<vmem>>, %arg4: memref<64x1xf32, #tpu.memory_space<vmem>>, %arg5: memref<64x1xf32, #tpu.memory_space<vmem>>, %arg6: memref<64x1xf32, #tpu.memory_space<vmem>>, %arg7: memref<1x1xf32, #tpu.memory_space<vmem>>, %arg8: memref<1x128xf32, #tpu.memory_space<vmem>>) attributes {dimension_semantics = [#tpu.dimension_semantics<parallel>], iteration_bounds = array<i64: 1>, scalar_prefetch = 0 : i64, scratch_operands = 0 : i64, tpu.core_type = #tpu.core_type<tc>, window_params = [{transform_indices = @transform_0, window_bounds = array<i64: 128, 32>}, {pipeline_mode = #tpu.pipeline_mode<synchronous>, transform_indices = @transform_1, window_bounds = array<i64: 64, 32>}, {pipeline_mode = #tpu.pipeline_mode<synchronous>, transform_indices = @transform_2, window_bounds = array<i64: 64, 64>}, {pipeline_mode = #tpu.pipeline_mode<synchronous>, transform_indices = @transform_3, window_bounds = array<i64: 64, 1>}, {pipeline_mode = #tpu.pipeline_mode<synchronous>, transform_indices = @transform_4, window_bounds = array<i64: 64, 1>}, {pipeline_mode = #tpu.pipeline_mode<synchronous>, transform_indices = @transform_5, window_bounds = array<i64: 64, 1>}, {pipeline_mode = #tpu.pipeline_mode<synchronous>, transform_indices = @transform_6, window_bounds = array<i64: 1, 1>}, {transform_indices = @transform_7, window_bounds = array<i64: 1, 128>}]} {
    %c0 = arith.constant 0 : index
    %c0_0 = arith.constant 0 : index
    %0 = vector.load %arg1[%c0, %c0_0] : memref<128x32xf32, #tpu.memory_space<vmem>>, vector<128x32xf32>
    %1 = arith.truncf %0 : vector<128x32xf32> to vector<128x32xbf16>
    %c0_1 = arith.constant 0 : index
    %c0_2 = arith.constant 0 : index
    %2 = vector.load %arg2[%c0_1, %c0_2] : memref<64x32xbf16, #tpu.memory_space<vmem>>, vector<64x32xbf16>
    %cst = arith.constant dense<0.000000e+00> : vector<64x128xf32>
    %3 = tpu.matmul %2, %1, %cst {dimension_numbers = #tpu.dot_dimension_numbers<[1], [1], [0], [0], [0, 0, 1, 0], [], []>} : vector<64x32xbf16>, vector<128x32xbf16>, vector<64x128xf32> -> vector<64x128xf32>
    %c0_3 = arith.constant 0 : index
    %c0_4 = arith.constant 0 : index
    %4 = vector.load %arg5[%c0_3, %c0_4] : memref<64x1xf32, #tpu.memory_space<vmem>>, vector<64x1xf32>
    %5 = vector.broadcast %4 : vector<64x1xf32> to vector<64x128xf32>
    %6 = arith.addf %3, %5 : vector<64x128xf32>
    %7 = math.tanh %6 : vector<64x128xf32>
    %c0_5 = arith.constant 0 : index
    %c0_6 = arith.constant 0 : index
    %8 = vector.load %arg3[%c0_5, %c0_6] : memref<64x64xbf16, #tpu.memory_space<vmem>>, vector<64x64xbf16>
    %9 = arith.truncf %7 : vector<64x128xf32> to vector<64x128xbf16>
    %cst_7 = arith.constant dense<0.000000e+00> : vector<64x128xf32>
    %10 = tpu.matmul %8, %9, %cst_7 {dimension_numbers = #tpu.dot_dimension_numbers<[1], [0], [0], [1], [0, 0, 1, 1], [], []>} : vector<64x64xbf16>, vector<64x128xbf16>, vector<64x128xf32> -> vector<64x128xf32>
    %c0_8 = arith.constant 0 : index
    %c0_9 = arith.constant 0 : index
    %11 = vector.load %arg6[%c0_8, %c0_9] : memref<64x1xf32, #tpu.memory_space<vmem>>, vector<64x1xf32>
    %12 = vector.broadcast %11 : vector<64x1xf32> to vector<64x128xf32>
    %13 = arith.addf %10, %12 : vector<64x128xf32>
    %14 = math.tanh %13 : vector<64x128xf32>
    %c0_10 = arith.constant 0 : index
    %c0_11 = arith.constant 0 : index
    %15 = vector.load %arg4[%c0_10, %c0_11] : memref<64x1xf32, #tpu.memory_space<vmem>>, vector<64x1xf32>
    %16 = vector.broadcast %15 : vector<64x1xf32> to vector<64x128xf32>
    %17 = arith.mulf %14, %16 : vector<64x128xf32>
    %cst_12 = arith.constant dense<0.000000e+00> : vector<128xf32>
    %18 = vector.multi_reduction <add>, %17, %cst_12 [0] : vector<64x128xf32> to vector<128xf32>
    %19 = vector.shape_cast %18 : vector<128xf32> to vector<1x128xf32>
    %c0_13 = arith.constant 0 : index
    %c0_14 = arith.constant 0 : index
    %20 = vector.load %arg7[%c0_13, %c0_14] : memref<1x1xf32, #tpu.memory_space<vmem>>, vector<1x1xf32>
    %21 = vector.broadcast %20 : vector<1x1xf32> to vector<1x128xf32>
    %22 = arith.addf %19, %21 : vector<1x128xf32>
    %c0_15 = arith.constant 0 : index
    %c0_16 = arith.constant 0 : index
    %23 = vector.load %arg8[%c0_15, %c0_16] : memref<1x128xf32, #tpu.memory_space<vmem>>, vector<1x128xf32>
    tpu.vector_store %arg8[%c0_15, %c0_16], %22 {strides = array<i32>} : memref<1x128xf32, #tpu.memory_space<vmem>>, vector<1x128xf32>,
    return
  }
  func.func @transform_0(%arg0: i32) -> (i32, i32) {
    %c0_i32 = arith.constant 0 : i32
    %c0_i32_0 = arith.constant 0 : i32
    return %arg0, %c0_i32 : i32, i32
  }
  func.func @transform_1(%arg0: i32) -> (i32, i32) {
    %c0_i32 = arith.constant 0 : i32
    %c0_i32_0 = arith.constant 0 : i32
    %c0_i32_1 = arith.constant 0 : i32
    return %c0_i32, %c0_i32_0 : i32, i32
  }
  func.func @transform_2(%arg0: i32) -> (i32, i32) {
    %c0_i32 = arith.constant 0 : i32
    %c0_i32_0 = arith.constant 0 : i32
    %c0_i32_1 = arith.constant 0 : i32
    return %c0_i32, %c0_i32_0 : i32, i32
  }
  func.func @transform_3(%arg0: i32) -> (i32, i32) {
    %c0_i32 = arith.constant 0 : i32
    %c0_i32_0 = arith.constant 0 : i32
    %c0_i32_1 = arith.constant 0 : i32
    return %c0_i32, %c0_i32_0 : i32, i32
  }
  func.func @transform_4(%arg0: i32) -> (i32, i32) {
    %c0_i32 = arith.constant 0 : i32
    %c0_i32_0 = arith.constant 0 : i32
    %c0_i32_1 = arith.constant 0 : i32
    return %c0_i32, %c0_i32_0 : i32, i32
  }
  func.func @transform_5(%arg0: i32) -> (i32, i32) {
    %c0_i32 = arith.constant 0 : i32
    %c0_i32_0 = arith.constant 0 : i32
    %c0_i32_1 = arith.constant 0 : i32
    return %c0_i32, %c0_i32_0 : i32, i32
  }
  func.func @transform_6(%arg0: i32) -> (i32, i32) {
    %c0_i32 = arith.constant 0 : i32
    %c0_i32_0 = arith.constant 0 : i32
    %c0_i32_1 = arith.constant 0 : i32
    return %c0_i32, %c0_i32_0 : i32, i32
  }
  func.func @transform_7(%arg0: i32) -> (i32, i32) {
    %c0_i32 = arith.constant 0 : i32
    %c0_i32_0 = arith.constant 0 : i32
    return %c0_i32, %arg0 : i32, i32
  }
}

</mosaic_0001>

<bundles_post_ra>
// kernel: tpu_custom_call.1
= control target key start
LH: loop header
LB: loop body
LE: loop exit
PB: predicated region body
PF: predicated region fallthrough
CT: control target
= control target key end

     0   :  { %s878_s0 = inlined_call_operand.vmem [shape: f32[128,32], index: 0, kind: input, shape index: {}]   ;;  %s879_s1 = inlined_call_operand.vmem [shape: bf16[64,32], index: 1, kind: input, shape index: {}]   ;;  %s880_s2 = inlined_call_operand.vmem [shape: bf16[64,64], index: 2, kind: input, shape index: {}]   ;;  %s881_s3 = inlined_call_operand.vmem [shape: f32[64,1], index: 3, kind: input, shape index: {}]   ;;  %s882_s4 = inlined_call_operand.vmem [shape: f32[64,1], index: 4, kind: input, shape index: {}]   ;;  %s883_s5 = inlined_call_operand.vmem [shape: f32[64,1], index: 5, kind: input, shape index: {}]   ;;  %s884_s6 = inlined_call_operand.<no memory space> [shape: f32[1,1], index: 6, kind: input, shape index: {}]   ;;  %s885_s7 = inlined_call_operand.hbm [shape: f32[1,128], index: 7, kind: output, shape index: {}]  }
   0x1   :  { %v12_v0 = vstv %s884_s6 }
   0x2   :  { %13 = vst [vmem:[#allocation2] sm:$0x1] %v12_v0 }
   0x3   :  { %v30_v1 = vld [vmem:[%s878_s0] sm:$0xff]  ;;  %v31_v2 = vld [vmem:[%s878_s0 + $0x8] sm:$0xff]  ;;  %vm130_vm0 = vcmask 261120   ;;  %v32_v3 = vld [vmem:[%s878_s0 + $0x10] sm:$0xff]  ;;  %v653_v6 = vmov 0  }
   0x4   :  { %v46_v4 = vpack.c.bf16 %v31_v2, %v30_v1  ;;  %v33_v5 = vld [vmem:[%s878_s0 + $0x18] sm:$0xff]  ;;  %587 = vset.pattern.permute.xlu0 %v653_v6  ;;  %588 = vset.pattern.permute.xlu1 %v653_v6  ;;  %v34_v9 = vld [vmem:[%s878_s0 + $0x20] sm:$0xff]  ;;  %v35_v10 = vld [vmem:[%s878_s0 + $0x28] sm:$0xff] }
   0x5   :  { %v47_v7 = vpack.c.bf16 %v33_v5, %v32_v3  ;;  %v589_v11 = vld [vmem:[%s879_s1] sm:$0xff]   ;;  %v48_v13 = vpack.c.bf16 %v35_v10, %v34_v9  ;;  %v64_v15 = vld [vmem:[%s882_s4 + $0x10] sm:$0xff]  ;;  %v63_v16 = vld [vmem:[%s882_s4 + $0x8] sm:$0xff] }
   0x6   :  { %577 = vmatprep.subr.msk.bf16.mxu0 %vm130_vm0, %v46_v4  ;;  %v144_v8 = vsel %vm130_vm0, %v46_v4, 0  ;;  %553 = vmatprep.mubr.msk.bf16.mxu0 %vm130_vm0, %v589_v11  ;;  %v62_v14 = vld [vmem:[%s882_s4] sm:$0xff]  ;;  %v65_v17 = vld [vmem:[%s882_s4 + $0x18] sm:$0xff]  ;;  %v36_v18 = vld [vmem:[%s878_s0 + $0x30] sm:$0xff] }
   0x7   :  { %538 = vmatpush3.bf16.xpose.msra.mxu0 %v144_v8  ;;  %v147_v12 = vsel %vm130_vm0, %v47_v7, 0  ;;  %72 = vperm.xlu0 %587, %v62_v14   ;;  %v37_v19 = vld [vmem:[%s878_s0 + $0x38] sm:$0xff]  ;;  %v66_v20 = vld [vmem:[%s882_s4 + $0x20] sm:$0xff]  ;;  %v67_v21 = vld [vmem:[%s882_s4 + $0x28] sm:$0xff]  ;;  %v150_v22 = vsel %vm130_vm0, %v48_v13, 0 }
   0x8   :  { %578 = vmatprep.subr.msk.bf16.mxu0 %vm130_vm0, %v47_v7  ;;  %82 = vperm.xlu1 %588, %v64_v15   ;;  %v49_v23 = vpack.c.bf16 %v37_v19, %v36_v18  ;;  %v68_v24 = vld [vmem:[%s882_s4 + $0x30] sm:$0xff]  ;;  %v69_v25 = vld [vmem:[%s882_s4 + $0x38] sm:$0xff] }
   0xb   :  { %77 = vperm.xlu0 %587, %v63_v16  }
   0xc   :  { %87 = vperm.xlu1 %588, %v65_v17  }
   0xf   :  { %540 = vmatpush3.bf16.xpose.msra.mxu0 %v147_v12  ;;  %92 = vperm.xlu0 %587, %v66_v20  }
  0x10   :  { %579 = vmatprep.subr.msk.bf16.mxu0 %vm130_vm0, %v48_v13  ;;  %97 = vperm.xlu1 %588, %v67_v21  }
  0x17   :  { %542 = vmatpush3.bf16.xpose.msra.mxu0 %v150_v22 }
  0x18   :  { %14 = vsyncpa [#allocation4], 0  ;;  %580 = vmatprep.subr.msk.bf16.mxu0 %vm130_vm0, %v49_v23  ;;  %v38_v26 = vld [vmem:[%s878_s0 + $0x40] sm:$0xff]  ;;  %v39_v27 = vld [vmem:[%s878_s0 + $0x48] sm:$0xff]  ;;  %102 = vperm.xlu0 %587, %v68_v24   ;;  %v153_v30 = vsel %vm130_vm0, %v49_v23, 0  ;;  %vm320_vm1 = vcmask 523264  }
  0x19   :  { %v252_v28 = vld [vmem:[%s883_s5] sm:$0xff]  ;;  %107 = vperm.xlu1 %588, %v69_v25   ;;  %v253_v29 = vld [vmem:[%s883_s5 + $0x8] sm:$0xff]  ;;  %v50_v31 = vpack.c.bf16 %v39_v27, %v38_v26  ;;  %v254_v32 = vld [vmem:[%s883_s5 + $0x10] sm:$0xff] }
  0x1a   :  { %v255_v33 = vld [vmem:[%s883_s5 + $0x18] sm:$0xff]  ;;  %v40_v34 = vld [vmem:[%s878_s0 + $0x50] sm:$0xff]  ;;  %v256_v36 = vld [vmem:[%s883_s5 + $0x20] sm:$0xff] }
  0x1b   :  { %v41_v35 = vld [vmem:[%s878_s0 + $0x58] sm:$0xff]  ;;  %v257_v37 = vld [vmem:[%s883_s5 + $0x28] sm:$0xff]  ;;  %v156_v38 = vsel %vm130_vm0, %v50_v31, 0  ;;  %v258_v40 = vld [vmem:[%s883_s5 + $0x30] sm:$0xff] }
  0x1c   :  { %262 = vperm.xlu0 %587, %v252_v28   ;;  %v51_v39 = vpack.c.bf16 %v41_v35, %v40_v34  ;;  %v259_v41 = vld [vmem:[%s883_s5 + $0x38] sm:$0xff]  ;;  %v42_v42 = vld [vmem:[%s878_s0 + $0x60] sm:$0xff]  ;;  %v43_v43 = vld [vmem:[%s878_s0 + $0x68] sm:$0xff] }
  0x1d   :  { %267 = vperm.xlu1 %588, %v253_v29   ;;  %v406_v44 = vld [vmem:[%s881_s3] sm:$0xff]  ;;  %v407_v45 = vld [vmem:[%s881_s3 + $0x8] sm:$0xff]  ;;  %v52_v47 = vpack.c.bf16 %v43_v43, %v42_v42  ;;  %v408_v48 = vld [vmem:[%s881_s3 + $0x10] sm:$0xff] }
  0x1e   :  { %v159_v46 = vsel %vm130_vm0, %v51_v39, 0  ;;  %v409_v49 = vld [vmem:[%s881_s3 + $0x18] sm:$0xff]  ;;  %v44_v50 = vld [vmem:[%s878_s0 + $0x70] sm:$0xff]  ;;  %v410_v52 = vld [vmem:[%s881_s3 + $0x20] sm:$0xff] }
  0x1f   :  { %544 = vmatpush3.bf16.xpose.msra.mxu0 %v153_v30  ;;  %v45_v51 = vld [vmem:[%s878_s0 + $0x78] sm:$0xff]  ;;  %v411_v53 = vld [vmem:[%s881_s3 + $0x28] sm:$0xff]  ;;  %v162_v54 = vsel %vm130_vm0, %v52_v47, 0  ;;  %v412_v56 = vld [vmem:[%s881_s3 + $0x30] sm:$0xff] }
  0x20   :  { %581 = vmatprep.subr.msk.bf16.mxu0 %vm130_vm0, %v50_v31  ;;  %272 = vperm.xlu0 %587, %v254_v32   ;;  %v53_v55 = vpack.c.bf16 %v45_v51, %v44_v50  ;;  %v413_v57 = vld [vmem:[%s881_s3 + $0x38] sm:$0xff]  ;;  %v475_v58 = vld [vmem:[#allocation2] sm:$0x1]  ;;  %v590_v60 = vld [vmem:[%s879_s1 + $0x8] sm:$0xff]  }
  0x21   :  { %277 = vperm.xlu1 %588, %v255_v33   ;;  %v591_v61 = vld [vmem:[%s879_s1 + $0x10] sm:$0xff]   ;;  %v592_v62 = vld [vmem:[%s879_s1 + $0x18] sm:$0xff]   ;;  %v593_v63 = vld [vmem:[%s880_s2] sm:$0xff]  }
  0x22   :  { %v165_v59 = vsel %vm130_vm0, %v53_v55, 0  ;;  %569 = vmatprep.mubr.msk.bf16.mxu1 %vm320_vm1, %v593_v63 }
  0x24   :  { %282 = vperm.xlu0 %587, %v256_v36   ;;  %v594_v36 = vld [vmem:[%s880_s2 + $0x8] sm:$0xff]  }
  0x25   :  { %287 = vperm.xlu1 %588, %v257_v37   ;;  %v595_v37 = vld [vmem:[%s880_s2 + $0x10] sm:$0xff]  }
  0x27   :  { %546 = vmatpush3.bf16.xpose.msra.mxu0 %v156_v38  ;;  %v596_v38 = vld [vmem:[%s880_s2 + $0x18] sm:$0xff]   ;;  %s654_s2 = smov [#allocation3]  }
  0x28   :  { %582 = vmatprep.subr.msk.bf16.mxu0 %vm130_vm0, %v51_v39  ;;  %292 = vperm.xlu0 %587, %v258_v40   ;;  %s493_s19 = sshll.u32 %s654_s2, 4  ;;  %s494_s19 = int_to_ptr.vmem [resolvable:$true] %s493_s19 }
  0x29   :  { %297 = vperm.xlu1 %588, %v259_v41   ;;  %s629_s4 = scalar_lea.vmem %s494_s19, 16  ;;  %s633_s20 = scalar_lea.vmem %s494_s19, 32 }
  0x2a   :  { %p630_p0 = scmp.ne.s32.totalorder %s494_s19, %s629_s4  ;;  %p634_p1 = scmp.lt.s32.totalorder %s494_s19, %s494_s19 }
  0x2b   :  { %p635_p2 = scmp.lt.s32.totalorder %s633_s20, %s629_s4 }
  0x2c   :  { %416 = vperm.xlu0 %587, %v406_v44  }
  0x2d   :  { %421 = vperm.xlu1 %588, %v407_v45   ;;  %p636_p3 = por %p635_p2, %p634_p1 }
  0x2f   :  { %548 = vmatpush3.bf16.xpose.msra.mxu0 %v159_v46  ;;  %p637_p4 = pnand %p636_p3, %p630_p0 }
  0x30   :  { %583 = vmatprep.subr.msk.bf16.mxu0 %vm130_vm0, %v52_v47  ;;  %426 = vperm.xlu0 %587, %v408_v48  }
  0x31   :  { %431 = vperm.xlu1 %588, %v409_v49  }
  0x34   :  { %436 = vperm.xlu0 %587, %v410_v52  }
  0x35   :  { %441 = vperm.xlu1 %588, %v411_v53  }
  0x37   :  { %550 = vmatpush3.bf16.xpose.msra.mxu0 %v162_v54 }
  0x38   :  { %584 = vmatprep.subr.msk.bf16.mxu0 %vm130_vm0, %v53_v55  ;;  %446 = vperm.xlu0 %587, %v412_v56  }
  0x39   :  { %451 = vperm.xlu1 %588, %v413_v57  }
  0x3c   :  { %478 = vperm.xlu0 %587, %v475_v58  }
  0x3f   :  { %552 = vmatpush3.bf16.xpose.msra.mxu0 %v165_v59 }
  0x46   :  { %554 = vmatmul.mubr.msk.bf16.vlgmr.msra.gmra.mrb[0].mxu0 %vm130_vm0, %v590_v60 }
  0x47   :  { %557 = vmatprep.mubr.msk.bf16.mxu0 %vm130_vm0, %v591_v61 }
  0x4e   :  { %558 = vmatmul.mubr.msk.bf16.gmra.mrb[4].mxu0 %vm130_vm0, %v592_v62 }
  0x86   :  { %v73_v0 = vpop.permute.xlu0 %72 }
  0x87   :  { %v83_v1 = vpop.permute.xlu1 %82 }
  0x8a   :  { %v78_v2 = vpop.permute.xlu0 %77 }
  0x8b   :  { %v88_v3 = vpop.permute.xlu1 %87 }
  0x8e   :  { %v93_v7 = vpop.permute.xlu0 %92 }
  0x8f   :  { %v98_v12 = vpop.permute.xlu1 %97 }
  0x97   :  { %v103_v14 = vpop.permute.xlu0 %102 }
  0x98   :  { %v108_v18 = vpop.permute.xlu1 %107 }
  0x9b   :  { %v263_v39 = vpop.permute.xlu0 %262 }
  0x9c   :  { %v268_v40 = vpop.permute.xlu1 %267 }
  0x9f   :  { %v273_v41 = vpop.permute.xlu0 %272 }
  0xa0   :  { %v278_v42 = vpop.permute.xlu1 %277 }
  0xa3   :  { %v283_v43 = vpop.permute.xlu0 %282 }
  0xa4   :  { %v288_v44 = vpop.permute.xlu1 %287 }
  0xa7   :  { %v293_v48 = vpop.permute.xlu0 %292 }
  0xa8   :  { %v298_v52 = vpop.permute.xlu1 %297 }
  0xab   :  { %v417_v55 = vpop.permute.xlu0 %416 }
  0xac   :  { %v422_v59 = vpop.permute.xlu1 %421 }
 0x119   :  { %v555_v4 = vpop.f32.mrb[0].mxu0 }
 0x11a   :  { %v210_v5 = vadd.f32 %v555_v4, %v83_v1  ;;  %v201_v6 = vpop.f32.mrb[1].mxu0 }
 0x11b   :  { %v202_v8 = vadd.f32 %v201_v6, %v73_v0  ;;  %v556_v9 = vpop.f32.mrb[2].mxu0 }
 0x11c   :  { %597 = vtanh.f32 %v210_v5  ;;  %v213_v10 = vadd.f32 %v556_v9, %v88_v3  ;;  %v204_v11 = vpop.f32.mrb[3].mxu0  ;;  %v432_v5 = vpop.permute.xlu1 %431 }
 0x11d   :  { %599 = vtanh.f32 %v202_v8  ;;  %v205_v13 = vadd.f32 %v204_v11, %v78_v2  ;;  %v427_v2 = vpop.permute.xlu0 %426 }
 0x11e   :  { %601 = vtanh.f32 %v213_v10 }
 0x11f   :  { %603 = vtanh.f32 %v205_v13 }
 0x121   :  { %v559_v15 = vpop.f32.mrb[4].mxu0  ;;  %v437_v11 = vpop.permute.xlu0 %436 }
 0x122   :  { %v226_v16 = vadd.f32 %v559_v15, %v103_v14  ;;  %v217_v17 = vpop.f32.mrb[5].mxu0  ;;  %v442_v15 = vpop.permute.xlu1 %441 }
 0x123   :  { %v218_v19 = vadd.f32 %v217_v17, %v93_v7  ;;  %v560_v20 = vpop.f32.mrb[6].mxu0 }
 0x124   :  { %605 = vtanh.f32 %v226_v16  ;;  %v229_v21 = vadd.f32 %v560_v20, %v108_v18  ;;  %v220_v22 = vpop.f32.mrb[7].mxu0 }
 0x125   :  { %607 = vtanh.f32 %v218_v19  ;;  %v221_v23 = vadd.f32 %v220_v22, %v98_v12 }
 0x126   :  { %v598_v24 = vpop.eup %597  ;;  %609 = vtanh.f32 %v229_v21 }
 0x127   :  { %v600_v25 = vpop.eup %599  ;;  %611 = vtanh.f32 %v221_v23  ;;  %v447_v23 = vpop.permute.xlu0 %446 }
 0x128   :  { %v602_v26 = vpop.eup %601 }
 0x129   :  { %v604_v27 = vpop.eup %603  ;;  %v249_v28 = vpack.c.bf16 %v602_v26, %v598_v24  ;;  %v452_v26 = vpop.permute.xlu1 %451 }
 0x12a   :  { %v248_v29 = vpack.c.bf16 %v604_v27, %v600_v25 }
 0x12c   :  { %561 = vmatprep.subr.bf16.mxu1 %v248_v29 }
 0x12d   :  { %562 = vmatpush3.bf16.msra.mxu1 %v248_v29  ;;  %v481_v29 = vlaneseq }
 0x12e   :  { %v606_v30 = vpop.eup %605  ;;  %563 = vmatprep.subr.bf16.mxu1 %v249_v28 }
 0x12f   :  { %v608_v31 = vpop.eup %607 }
 0x130   :  { %v610_v32 = vpop.eup %609 }
 0x131   :  { %v612_v33 = vpop.eup %611  ;;  %564 = vmatpush3.bf16.msra.mxu1 %v249_v28  ;;  %v251_v34 = vpack.c.bf16 %v610_v32, %v606_v30  ;;  %v482_v32 = vshrl.u32 %v481_v29, 7 }
 0x132   :  { %v250_v35 = vpack.c.bf16 %v612_v33, %v608_v31 }
 0x134   :  { %565 = vmatprep.subr.bf16.mxu1 %v250_v35 }
 0x135   :  { %566 = vmatpush3.bf16.msra.mxu1 %v250_v35  ;;  %v483_v35 = vsub.s32 0, %v482_v32 }
 0x136   :  { %567 = vmatprep.subr.bf16.mxu1 %v251_v34 }
 0x139   :  { %568 = vmatpush3.bf16.msra.mxu1 %v251_v34 }
 0x13c   :  { %570 = vmatmul.mubr.msk.bf16.vlgmr.msra.gmra.mrb[0].mxu1 %vm320_vm1, %v594_v36 }
 0x13d   :  { %573 = vmatprep.mubr.msk.bf16.mxu1 %vm320_vm1, %v595_v37  ;;  %v479_v37 = vpop.permute.xlu0 %478 }
 0x144   :  { %574 = vmatmul.mubr.msk.bf16.gmra.mrb[4].mxu1 %vm320_vm1, %v596_v38 }
 0x20f   :  { %v571_v45 = vpop.f32.mrb[0].mxu1 }
 0x210   :  { %v376_v46 = vadd.f32 %v571_v45, %v273_v41  ;;  %v367_v47 = vpop.f32.mrb[1].mxu1 }
 0x211   :  { %v368_v49 = vadd.f32 %v367_v47, %v263_v39  ;;  %v572_v50 = vpop.f32.mrb[2].mxu1  ;;  %v484_v39 = vrot.slane %v479_v37, %v483_v35 }
 0x212   :  { %v370_v51 = vpop.f32.mrb[3].mxu1  ;;  %v379_v53 = vadd.f32 %v572_v50, %v278_v42 }
 0x213   :  { %613 = vtanh.f32 %v368_v49  ;;  %v371_v54 = vadd.f32 %v370_v51, %v268_v40 }
 0x214   :  { %615 = vtanh.f32 %v376_v46 }
 0x215   :  { %617 = vtanh.f32 %v371_v54 }
 0x216   :  { %619 = vtanh.f32 %v379_v53 }
 0x217   :  { %v575_v56 = vpop.f32.mrb[4].mxu1 }
 0x218   :  { %v392_v57 = vadd.f32 %v575_v56, %v293_v48  ;;  %v383_v58 = vpop.f32.mrb[5].mxu1 }
 0x219   :  { %v384_v60 = vadd.f32 %v383_v58, %v283_v43  ;;  %v576_v61 = vpop.f32.mrb[6].mxu1 }
 0x21a   :  { %v386_v62 = vpop.f32.mrb[7].mxu1  ;;  %v395_v63 = vadd.f32 %v576_v61, %v298_v52 }
 0x21b   :  { %621 = vtanh.f32 %v384_v60  ;;  %v387_v0 = vadd.f32 %v386_v62, %v288_v44 }
 0x21c   :  { %623 = vtanh.f32 %v392_v57 }
 0x21d   :  { %v614_v1 = vpop.eup %613  ;;  %625 = vtanh.f32 %v387_v0 }
 0x21e   :  { %v616_v3 = vpop.eup %615  ;;  %627 = vtanh.f32 %v395_v63  ;;  %v454_v6 = vmul.f32 %v614_v1, %v417_v55 }
 0x21f   :  { %v618_v4 = vpop.eup %617  ;;  %v456_v9 = vmul.f32 %v616_v3, %v427_v2 }
 0x220   :  { %v455_v7 = vmul.f32 %v618_v4, %v422_v59  ;;  %v620_v8 = vpop.eup %619 }
 0x221   :  { %v457_v12 = vmul.f32 %v620_v8, %v432_v5 }
 0x222   :  { %v462_v10 = vadd.f32 %v455_v7, %v454_v6 }
 0x224   :  { %v463_v13 = vadd.f32 %v462_v10, %v456_v9 }
 0x225   :  { %v622_v14 = vpop.eup %621 }
 0x226   :  { %v624_v16 = vpop.eup %623  ;;  %v458_v17 = vmul.f32 %v622_v14, %v437_v11  ;;  %v464_v18 = vadd.f32 %v463_v13, %v457_v12 }
 0x227   :  { %v626_v19 = vpop.eup %625  ;;  %v460_v24 = vmul.f32 %v624_v16, %v447_v23 }
 0x228   :  { %v465_v20 = vadd.f32 %v464_v18, %v458_v17  ;;  %v459_v21 = vmul.f32 %v626_v19, %v442_v15  ;;  %v628_v22 = vpop.eup %627 }
 0x229   :  { %v461_v27 = vmul.f32 %v628_v22, %v452_v26 }
 0x22a   :  { %v466_v25 = vadd.f32 %v465_v20, %v459_v21 }
 0x22c   :  { %v467_v28 = vadd.f32 %v466_v25, %v460_v24 }
 0x22e   :  { %v468_v30 = vadd.f32 %v467_v28, %v461_v27 }
 0x230   :  { %v469_v31 = vrot.slane %v468_v30, 4 }
 0x232   :  { %v470_v33 = vadd.f32 %v469_v31, %v468_v30 }
 0x234   :  { %v471_v34 = vrot.slane %v470_v33, 2 }
 0x236   :  { %v472_v36 = vadd.f32 %v471_v34, %v470_v33 }
 0x238   :  { %v473_v38 = vrot.slane %v472_v36, 1 }
 0x23a   :  { %v474_v40 = vadd.f32 %v473_v38, %v472_v36 }
 0x23c   :  { %v485_v41 = vadd.f32 %v484_v39, %v474_v40 }
 0x23e   :  { %486 = vst [vmem:[#allocation3] sm:$0x1] %v485_v41 }
 0x23f   :  { %640 = shalt.err (!%p637_p4)
}
 0x240   :  { %s641_s23 = scalar_lea.hbm %s885_s7, 16 }
 0x241   :  { %p642_p5 = scmp.ne.s32.totalorder %s885_s7, %s641_s23  ;;  %p645_p6 = scmp.lt.u32.totalorder %s641_s23, %s885_s7 }
 0x243   :  { %p647_p7 = pnand %p645_p6, %p642_p5 }
 0x245   :  { %650 = shalt.err (!%p647_p7)
}
 0x246   :  { %496 = dma.vmem_to_hbm [thread:$0]  %s494_s19, 16, %s885_s7, [#allocation4]  }
 0x247   :  { %651 = dma.done.wait [#allocation4], 16  }
 0x248   :  { %652 = vsyncadd [#allocation4], 4294967280 }
 0x249   :  { %500 = vsyncpa [#allocation4], 1 }

</bundles_post_ra>
